<compile_context>
chip_gen: v7x
topology: tpu7x:2x2x1
jax: 0.10.0
libtpu: 0.0.40
codegen_flags: <defaults>
</compile_context>

<pallas_src>
import jax
import jax.numpy as jnp
from jax import lax
from jax.experimental import pallas as pl
from jax.experimental.pallas import tpu as pltpu

# --- small, module-consistent hyperparameters -------------------------------
EMBED_SIZE = 32                     # E
SEQ_LEN = EMBED_SIZE // 2           # S  (required by the rotary broadcasting)
BATCH = 2                           # N
VOCAB_SIZE = 256                    # V
# heads / ff_hidden_dim / num_layers / dropout only feed the (undefined)
# MyGPTLayer stack, which is omitted — see TODO above.

ROW_TILE = 16                       # rows of the (N*S, V) logits per grid step


# -----------------------------------------------------------------------------
# Fused kernel: one-hot embedding gather + rotary positional add + fc_out.
# -----------------------------------------------------------------------------
def fused_gpt_kernel(tok_ref, table_ref, pos_ref, w_ref, b_ref, out_ref):
    """One grid step produces a lane-dense (ROW_TILE, V) logits block.

    tok_ref   : (ROW_TILE, 1) int32 token ids (VMEM).
    table_ref : (V, E) f32 embedding table, resident in VMEM.
    pos_ref   : (1, E) f32 positional encoding (constant over batch & seq).
    w_ref     : (E, V) f32 fc_out weight (transpose of PyTorch's (V, E)).
    b_ref     : (1, V) f32 fc_out bias.
    out_ref   : (ROW_TILE, V) f32 logits block.
    """
    tm, v = out_ref.shape
    tok = tok_ref[...]                                         # (tm, 1) int32
    # Exact gather via one-hot matmul on the MXU (0/1 weights -> bit-exact).
    iota = lax.broadcasted_iota(jnp.int32, (tm, v), 1)
    one_hot = (tok == iota).astype(jnp.float32)                # (tm, V)
    x = jnp.dot(one_hot, table_ref[...],
                preferred_element_type=jnp.float32)            # (tm, E) gather
    x = x + pos_ref[...]                                       # broadcast rows
    out_ref[...] = (
        jnp.dot(x, w_ref[...], preferred_element_type=jnp.float32)
        + b_ref[...]
    )


def fused_gpt_call(tok2d, table, pos_enc, w_out, b_out2d):
    M = tok2d.shape[0]
    V, E = table.shape
    grid_spec = pltpu.PrefetchScalarGridSpec(
        num_scalar_prefetch=0,
        grid=(M // ROW_TILE,),
        in_specs=[
            pl.BlockSpec((ROW_TILE, 1), lambda i: (i, 0)),     # token ids
            pl.BlockSpec((V, E), lambda i: (0, 0)),            # embedding table
            pl.BlockSpec((1, E), lambda i: (0, 0)),            # pos encoding
            pl.BlockSpec((E, V), lambda i: (0, 0)),            # fc_out weight
            pl.BlockSpec((1, V), lambda i: (0, 0)),            # fc_out bias
        ],
        out_specs=pl.BlockSpec((ROW_TILE, V), lambda i: (i, 0)),
    )
    return pl.pallas_call(
        fused_gpt_kernel,
        out_shape=jax.ShapeDtypeStruct((M, V), jnp.float32),
        grid_spec=grid_spec,
        compiler_params=pltpu.CompilerParams(
            dimension_semantics=("parallel",)),
    )(tok2d, table, pos_enc, w_out, b_out2d)


# -----------------------------------------------------------------------------
# Parameter construction (deterministic) and forward wrapper.
# -----------------------------------------------------------------------------
def make_params(key):
    k_emb, k_w, k_b = jax.random.split(key, 3)
    E, V, S = EMBED_SIZE, VOCAB_SIZE, SEQ_LEN
    # nn.Embedding default: N(0, 1); nn.Linear default: U(-1/sqrt(fan_in), ..)
    embedding = jax.random.normal(k_emb, (V, E), jnp.float32)
    bound = 1.0 / jnp.sqrt(E)
    w_out = jax.random.uniform(k_w, (E, V), jnp.float32, -bound, bound)
    b_out = jax.random.uniform(k_b, (V,), jnp.float32, -bound, bound)
    # RotaryEmbedding: freqs = 10000 ** (arange(0, E, 2) / E); the quirky
    # broadcast makes pos_enc constant over batch & seq -> compute once.
    freqs = jnp.power(10000.0, jnp.arange(0, E, 2, dtype=jnp.float32) / E)  # (E/2,)
    positions = jnp.arange(S, dtype=jnp.float32)                            # S == E/2
    angles = positions / freqs
    pos_enc = jnp.concatenate([jnp.sin(angles), jnp.cos(angles)]).reshape(1, E)
    return dict(embedding=embedding, w_out=w_out, b_out=b_out,
                b_out2d=b_out.reshape(1, V), pos_enc=pos_enc)


def gpt_forward(tokens, mask, params):
    del mask  # only consumed by the (undefined) MyGPTLayer stack, see TODO.
    N, S = tokens.shape
    tok2d = tokens.reshape(N * S, 1).astype(jnp.int32)
    # TODO(synk): MyGPTLayer is not defined in the reference; layer stack skipped.
    logits = fused_gpt_call(tok2d, params["embedding"], params["pos_enc"],
                            params["w_out"], params["b_out2d"])
    return logits.reshape(N, S, VOCAB_SIZE)


def gpt_forward_ref(tokens, mask, params):
    """Pure-JAX reference mirroring the PyTorch forward (for a sanity check)."""
    del mask
    E = EMBED_SIZE
    S = tokens.shape[1]
    freqs = jnp.power(10000.0, jnp.arange(0, E, 2, dtype=jnp.float32) / E)
    positions = jnp.arange(S, dtype=jnp.float32)             # S == E/2
    angles = positions / freqs
    pos_enc = jnp.concatenate([jnp.sin(angles), jnp.cos(angles)])  # (E,)
    x = jnp.take(params["embedding"], tokens, axis=0) + pos_enc[None, None, :]
    return x @ params["w_out"] + params["b_out"]


if __name__ == "__main__":
    key = jax.random.PRNGKey(0)
    k_tok, k_par = jax.random.split(key)
    tokens = jax.random.randint(k_tok, (BATCH, SEQ_LEN), 0, VOCAB_SIZE,
                                dtype=jnp.int32)
    mask = jnp.ones((BATCH, SEQ_LEN), jnp.float32)
    params = make_params(k_par)

    out = jax.jit(gpt_forward)(tokens, mask, params)
    out = jax.block_until_ready(out)
    assert out.shape == (BATCH, SEQ_LEN, VOCAB_SIZE), out.shape

    ref = gpt_forward_ref(tokens, mask, params)
    assert jnp.allclose(out, ref, atol=1e-4, rtol=1e-4), float(
        jnp.max(jnp.abs(out - ref)))

    print("KERNEL_OK")
</pallas_src>

<mosaic_0001>
module attributes {stable_mosaic.version = 11 : i64} {
  func.func @fused_gpt_kernel(%arg0: i32, %arg1: memref<16x1xi32, #tpu.memory_space<vmem>>, %arg2: memref<256x32xf32, #tpu.memory_space<vmem>>, %arg3: memref<1x32xf32, #tpu.memory_space<vmem>>, %arg4: memref<32x256xf32, #tpu.memory_space<vmem>>, %arg5: memref<1x256xf32, #tpu.memory_space<vmem>>, %arg6: memref<16x256xf32, #tpu.memory_space<vmem>>) attributes {dimension_semantics = [#tpu.dimension_semantics<parallel>], iteration_bounds = array<i64: 2>, scalar_prefetch = 0 : i64, scratch_operands = 0 : i64, tpu.core_type = #tpu.core_type<tc>, window_params = [{transform_indices = @transform_0, window_bounds = array<i64: 16, 1>}, {pipeline_mode = #tpu.pipeline_mode<synchronous>, transform_indices = @transform_1, window_bounds = array<i64: 256, 32>}, {pipeline_mode = #tpu.pipeline_mode<synchronous>, transform_indices = @transform_2, window_bounds = array<i64: 1, 32>}, {pipeline_mode = #tpu.pipeline_mode<synchronous>, transform_indices = @transform_3, window_bounds = array<i64: 32, 256>}, {pipeline_mode = #tpu.pipeline_mode<synchronous>, transform_indices = @transform_4, window_bounds = array<i64: 1, 256>}, {transform_indices = @transform_5, window_bounds = array<i64: 16, 256>}]} {
    %c0 = arith.constant 0 : index
    %c0_0 = arith.constant 0 : index
    %0 = vector.load %arg1[%c0, %c0_0] : memref<16x1xi32, #tpu.memory_space<vmem>>, vector<16x1xi32>
    %1 = tpu.iota {dimensions = array<i32: 1>} : vector<16x256xi32>
    %2 = vector.broadcast %0 : vector<16x1xi32> to vector<16x256xi32>
    %3 = arith.cmpi eq, %2, %1 : vector<16x256xi32>
    %4 = arith.extui %3 : vector<16x256xi1> to vector<16x256xi32>
    %5 = arith.sitofp %4 : vector<16x256xi32> to vector<16x256xf32>
    %c0_1 = arith.constant 0 : index
    %c0_2 = arith.constant 0 : index
    %6 = vector.load %arg2[%c0_1, %c0_2] : memref<256x32xf32, #tpu.memory_space<vmem>>, vector<256x32xf32>
    %cst = arith.constant dense<0.000000e+00> : vector<16x32xf32>
    %7 = tpu.matmul %5, %6, %cst {dimension_numbers = #tpu.dot_dimension_numbers<[1], [0], [0], [1], [0, 0, 1, 1], [], []>} : vector<16x256xf32>, vector<256x32xf32>, vector<16x32xf32> -> vector<16x32xf32>
    %c0_3 = arith.constant 0 : index
    %c0_4 = arith.constant 0 : index
    %8 = vector.load %arg3[%c0_3, %c0_4] : memref<1x32xf32, #tpu.memory_space<vmem>>, vector<1x32xf32>
    %9 = vector.broadcast %8 : vector<1x32xf32> to vector<16x32xf32>
    %10 = arith.addf %7, %9 : vector<16x32xf32>
    %c0_5 = arith.constant 0 : index
    %c0_6 = arith.constant 0 : index
    %11 = vector.load %arg4[%c0_5, %c0_6] : memref<32x256xf32, #tpu.memory_space<vmem>>, vector<32x256xf32>
    %cst_7 = arith.constant dense<0.000000e+00> : vector<16x256xf32>
    %12 = tpu.matmul %10, %11, %cst_7 {dimension_numbers = #tpu.dot_dimension_numbers<[1], [0], [0], [1], [0, 0, 1, 1], [], []>} : vector<16x32xf32>, vector<32x256xf32>, vector<16x256xf32> -> vector<16x256xf32>
    %c0_8 = arith.constant 0 : index
    %c0_9 = arith.constant 0 : index
    %13 = vector.load %arg5[%c0_8, %c0_9] : memref<1x256xf32, #tpu.memory_space<vmem>>, vector<1x256xf32>
    %14 = vector.broadcast %13 : vector<1x256xf32> to vector<16x256xf32>
    %15 = arith.addf %12, %14 : vector<16x256xf32>
    %c0_10 = arith.constant 0 : index
    %c0_11 = arith.constant 0 : index
    %16 = vector.load %arg6[%c0_10, %c0_11] : memref<16x256xf32, #tpu.memory_space<vmem>>, vector<16x256xf32>
    tpu.vector_store %arg6[%c0_10, %c0_11], %15 {strides = array<i32>} : memref<16x256xf32, #tpu.memory_space<vmem>>, vector<16x256xf32>,
    return
  }
  func.func @transform_0(%arg0: i32) -> (i32, i32) {
    %c0_i32 = arith.constant 0 : i32
    %c0_i32_0 = arith.constant 0 : i32
    return %arg0, %c0_i32 : i32, i32
  }
  func.func @transform_1(%arg0: i32) -> (i32, i32) {
    %c0_i32 = arith.constant 0 : i32
    %c0_i32_0 = arith.constant 0 : i32
    %c0_i32_1 = arith.constant 0 : i32
    return %c0_i32, %c0_i32_0 : i32, i32
  }
  func.func @transform_2(%arg0: i32) -> (i32, i32) {
    %c0_i32 = arith.constant 0 : i32
    %c0_i32_0 = arith.constant 0 : i32
    %c0_i32_1 = arith.constant 0 : i32
    return %c0_i32, %c0_i32_0 : i32, i32
  }
  func.func @transform_3(%arg0: i32) -> (i32, i32) {
    %c0_i32 = arith.constant 0 : i32
    %c0_i32_0 = arith.constant 0 : i32
    %c0_i32_1 = arith.constant 0 : i32
    return %c0_i32, %c0_i32_0 : i32, i32
  }
  func.func @transform_4(%arg0: i32) -> (i32, i32) {
    %c0_i32 = arith.constant 0 : i32
    %c0_i32_0 = arith.constant 0 : i32
    %c0_i32_1 = arith.constant 0 : i32
    return %c0_i32, %c0_i32_0 : i32, i32
  }
  func.func @transform_5(%arg0: i32) -> (i32, i32) {
    %c0_i32 = arith.constant 0 : i32
    %c0_i32_0 = arith.constant 0 : i32
    return %arg0, %c0_i32 : i32, i32
  }
}

</mosaic_0001>

<bundles_post_ra>
// kernel: gpt_forward.1
= control target key start
LH: loop header
LB: loop body
LE: loop exit
PB: predicated region body
PF: predicated region fallthrough
CT: control target
= control target key end

     0   :  { %10 = vsyncpa [#allocation3], 0  ;;  %s1025_s0 = inlined_call_operand.vmem [shape: s32[32,1], index: 0, kind: input, shape index: {}]   ;;  %s1026_s1 = inlined_call_operand.vmem [shape: f32[256,32], index: 1, kind: input, shape index: {}]   ;;  %s1027_s2 = inlined_call_operand.vmem [shape: f32[1,32], index: 2, kind: input, shape index: {}]   ;;  %s1028_s3 = inlined_call_operand.vmem [shape: f32[32,256], index: 3, kind: input, shape index: {}]   ;;  %s1029_s4 = inlined_call_operand.vmem [shape: f32[1,256], index: 4, kind: input, shape index: {}]   ;;  %s1030_s5 = inlined_call_operand.hbm [shape: f32[32,256], index: 5, kind: output, shape index: {}]  }
   0x1   :  { %12 = vsyncpa [#allocation3 + $0x1], 0  ;;  %s797_s18 = smov 0   ;;  %s799_s19 = smov 0  }
   0x2   :  { %s801_s20 = smov 0   ;;  %s803_s21 = smov 0  }
   0x3 LB: > { %s818_s22 = sadd.s32 4294967295, %s759_s21   ;;  %s548_s23 = sadd.s32 4294967294, %s759_s21   ;;  %s759_s21 = sphi %s803_s21, %s1036_s21   ;;  %s755_s20 = sphi %s801_s20, %s1035_s20   ;;  %s751_s19 = sphi %s799_s19, %s1034_s19   ;;  %s747_s18 = sphi %s797_s18, %s1033_s18  }
   0x4   : > { %s822_s24 = sadd.s32 1, %s759_s21   ;;  %s135_s25 = sadd.s32 1, %s755_s20 }
   0x5   : > { %s132_s26 = ssub.s32 %s759_s21, %s822_s24  ;;  %p145_p0 = scmp.ne.s32.totalorder %s755_s20, %s751_s19 }
   0x6   : > { %p133_p1 = scmp.eq.s32.totalorder %s132_s26, 0  ;;  %p146_p2 = scmp.eq.s32.totalorder %s818_s22, 1 }
   0x7   : > { %p151_p3 = scmp.ne.s32.totalorder %s751_s19, %s747_s18  ;;  %p152_p4 = scmp.eq.s32.totalorder %s548_s23, 1 }
   0x8   : > { %s833_s27 = scalar_select %p133_p1, %s755_s20, %s135_s25  }
   0x9   : > { %p835_p5 = por %p146_p2, %p145_p0  ;;  %p839_p6 = por %p152_p4, %p151_p3 }
   0xa   : > { %p551_p7 = scmp.ge.s32.totalorder %s759_s21, 1  ;;  %p191_p8 = scmp.lt.s32.totalorder %s759_s21, 3 }
   0xc   : > { %p192_p9 = pnand %p551_p7, %p191_p8 }
   0xd   : > { %s553_s30 = sshll.u32 (!%p192_p9), %s818_s22, 1  ;;  %v265_v0 = vld [vmem:[%s1026_s1 + $0x80] sm:$0xff] (!%p192_p9)  ;;  %v266_v1 = vld [vmem:[%s1026_s1 + $0x88] sm:$0xff] (!%p192_p9)  ;;  %v761_v3 = vmov (!%p192_p9), 0   ;;  %v267_v6 = vld [vmem:[%s1026_s1 + $0x90] sm:$0xff] (!%p192_p9)  ;;  %v228_v57 = vlaneseq (!%p192_p9)  ;;  %v762_v61 = vmov (!%p192_p9), 1.0  }
   0xe   : > { %195 = sbr.rel (%p192_p9) target bundleno = 606 (0x25e), region = 40  ;;  %v249_v2 = vld [vmem:[%s1026_s1] sm:$0xff] (!%p192_p9)  ;;  %696 = vset.pattern.permute.xlu0 (!%p192_p9), %v761_v3  ;;  %p220_p10 = scmp.lt.s32.totalorder (!%p192_p9), %s553_s30, 3  ;;  %v612_v4 = vpack.c.bf16 (!%p192_p9), %v266_v1, %v265_v0  ;;  %v250_v5 = vld [vmem:[%s1026_s1 + $0x8] sm:$0xff] (!%p192_p9)  ;;  %v268_v7 = vld [vmem:[%s1026_s1 + $0x98] sm:$0xff] (!%p192_p9)  ;;  %vm383_vm4 = vcmask (!%p192_p9), 261120  }
   0xf   : > { %v614_v8 = vpack.c.bf16 (!%p192_p9), %v250_v5, %v249_v2  ;;  %v616_v9 = vpack.c.bf16 (!%p192_p9), %v268_v7, %v267_v6  ;;  %v251_v10 = vld [vmem:[%s1026_s1 + $0x10] sm:$0xff] (!%p192_p9)  ;;  %v252_v11 = vld [vmem:[%s1026_s1 + $0x18] sm:$0xff] (!%p192_p9)  ;;  %v269_v12 = vld [vmem:[%s1026_s1 + $0xa0] sm:$0xff] (!%p192_p9)  ;;  %v229_v58 = vand.u32 (!%p192_p9), 127, %v228_v57  ;;  %v763_v5 = vmov (!%p192_p9), 0.0   ;;  %s216_s13 = sand.u32 (!%p192_p9), 1, %s751_s19  }
  0x10   : > { %613 = vmatprep.subr.bf16.mxu0 (!%p192_p9), %v612_v4  ;;  %v270_v13 = vld [vmem:[%s1026_s1 + $0xa8] sm:$0xff] (!%p192_p9)  ;;  %v618_v14 = vpack.c.bf16 (!%p192_p9), %v252_v11, %v251_v10  ;;  %v253_v16 = vld [vmem:[%s1026_s1 + $0x20] sm:$0xff] (!%p192_p9)  ;;  %v271_v18 = vld [vmem:[%s1026_s1 + $0xb0] sm:$0xff] (!%p192_p9)  ;;  %454 = vmatprep.mubr.f32.mxu1 (!%p192_p9), %v763_v5  ;;  %s552_s16 = sshll.u32 (!%p192_p9), %s216_s13, 5  ;;  %s573_s25 = sshll.u32 (!%p192_p9), %s818_s22, 9 }
  0x11   : > { %615 = vmatpush3.bf16.msra.mxu0 (!%p192_p9), %v614_v8  ;;  %v620_v15 = vpack.c.bf16 (!%p192_p9), %v270_v13, %v269_v12  ;;  %v254_v17 = vld [vmem:[%s1026_s1 + $0x28] sm:$0xff] (!%p192_p9)  ;;  %v272_v19 = vld [vmem:[%s1026_s1 + $0xb8] sm:$0xff] (!%p192_p9)  ;;  %v255_v24 = vld [vmem:[%s1026_s1 + $0x30] sm:$0xff] (!%p192_p9)  ;;  %v230_v59 = vadd.s32 (!%p192_p9), 128, %v229_v58  ;;  %s218_s17 = scalar_lea.vmem (!%p192_p9), [#allocation2], %s552_s16  ;;  %s984_s7 = scalar_lea.sflag (!%p192_p9), [#allocation3], %s216_s13 }
  0x12   : > { %617 = vmatprep.subr.bf16.mxu0 (!%p192_p9), %v616_v9  ;;  %v622_v21 = vpack.c.bf16 (!%p192_p9), %v254_v17, %v253_v16  ;;  %v624_v23 = vpack.c.bf16 (!%p192_p9), %v272_v19, %v271_v18  ;;  %v256_v25 = vld [vmem:[%s1026_s1 + $0x38] sm:$0xff] (!%p192_p9)  ;;  %v273_v26 = vld [vmem:[%s1026_s1 + $0xc0] sm:$0xff] (!%p192_p9)  ;;  %v274_v27 = vld [vmem:[%s1026_s1 + $0xc8] sm:$0xff] (!%p192_p9)  ;;  %s764_s8 = smov (!%p192_p9), [#allocation2]  }
  0x13   : > { %v626_v28 = vpack.c.bf16 (!%p192_p9), %v256_v25, %v255_v24  ;;  %v257_v29 = vld [vmem:[%s1026_s1 + $0x40] sm:$0xff] (!%p192_p9)  ;;  %v628_v30 = vpack.c.bf16 (!%p192_p9), %v274_v27, %v273_v26  ;;  %v258_v31 = vld [vmem:[%s1026_s1 + $0x48] sm:$0xff] (!%p192_p9)  ;;  %v275_v32 = vld [vmem:[%s1026_s1 + $0xd0] sm:$0xff] (!%p192_p9)  ;;  %s701_s9 = sshll.u32 (!%p192_p9), %s764_s8, 4  ;;  %s702_s9 = int_to_ptr.vmem [resolvable:$false] %s701_s9 }
  0x14   : > { %v276_v33 = vld [vmem:[%s1026_s1 + $0xd8] sm:$0xff] (!%p192_p9)  ;;  %v364_v34 = vld [vmem:[%s1028_s3 + $0x8] sm:$0xff] (!%p192_p9)  ;;  %v363_v36 = vld [vmem:[%s1028_s3] sm:$0xff] (!%p192_p9)  ;;  %v630_v39 = vpack.c.bf16 (!%p192_p9), %v258_v31, %v257_v29  ;;  %s703_s10 = scalar_lea.vmem (!%p192_p9), %s702_s9, 1024 }
  0x15   : > { %s1038_s30 = smov (!%p220_p10, %s553_s30), 3  ;;  %619 = vmatpush3.bf16.msra.mxu0 %v618_v14  ;;  %v366_v35 = vld [vmem:[%s1028_s3 + $0x18] sm:$0xff]  ;;  %v365_v38 = vld [vmem:[%s1028_s3 + $0x10] sm:$0xff]  ;;  %v632_v41 = vpack.c.bf16 %v276_v33, %v275_v32  ;;  %v277_v44 = vld [vmem:[%s1026_s1 + $0xe0] sm:$0xff] }
  0x16   : > { %s554_s11 = sshll.u32 %s1038_s30, 3  ;;  %621 = vmatprep.subr.bf16.mxu0 %v620_v15  ;;  %v644_v37 = vpack.c.bf16 %v366_v35, %v364_v34  ;;  %v646_v40 = vpack.c.bf16 %v365_v38, %v363_v36  ;;  %v259_v42 = vld [vmem:[%s1026_s1 + $0x50] sm:$0xff]  ;;  %v260_v43 = vld [vmem:[%s1026_s1 + $0x58] sm:$0xff]  ;;  %v278_v45 = vld [vmem:[%s1026_s1 + $0xe8] sm:$0xff]  ;;  %v374_v15 = vshrl.u32 %v228_v57, 7  ;;  %s982_s30 = scalar_lea.hbm %s1030_s5, %s573_s25 }
  0x17   : > { %s223_s23 = scalar_lea.vmem %s1025_s0, %s554_s11  ;;  %v634_v46 = vpack.c.bf16 %v260_v43, %v259_v42  ;;  %v636_v47 = vpack.c.bf16 %v278_v45, %v277_v44  ;;  %v261_v48 = vld [vmem:[%s1026_s1 + $0x60] sm:$0xff]  ;;  %v262_v49 = vld [vmem:[%s1026_s1 + $0x68] sm:$0xff]  ;;  %v279_v50 = vld [vmem:[%s1026_s1 + $0xf0] sm:$0xff] }
  0x18   : > { %v226_v20 = vld [vmem:[%s223_s23] sm:$0xff]  ;;  %v227_v22 = vld [vmem:[%s223_s23 + $0x8] sm:$0xff]  ;;  %645 = vmatprep.subr.bf16.mxu1 %v644_v37  ;;  %v280_v51 = vld [vmem:[%s1026_s1 + $0xf8] sm:$0xff]  ;;  %v638_v52 = vpack.c.bf16 %v262_v49, %v261_v48  ;;  %v375_v16 = vsub.s32 0, %v374_v15  ;;  %v379_v18 = vsub.s32 1, %v374_v15  ;;  %s486_s23 = sshll.u32 %s218_s17, 4  ;;  %s977_s23 = int_to_ptr.vmem [resolvable:$true] %s486_s23 }
  0x19   : > { %232 = vperm.xlu0 %696, %v226_v20   ;;  %623 = vmatpush3.bf16.msra.mxu0 %v622_v21  ;;  %v640_v53 = vpack.c.bf16 %v280_v51, %v279_v50  ;;  %v263_v54 = vld [vmem:[%s1026_s1 + $0x70] sm:$0xff]  ;;  %v264_v55 = vld [vmem:[%s1026_s1 + $0x78] sm:$0xff]  ;;  %v368_v63 = vld [vmem:[%s1028_s3 + $0x28] sm:$0xff]  ;;  %s697_s22 = scalar_lea.vmem %s977_s23, 512  ;;  %p704_p0 = scmp.lt.s32.totalorder %s977_s23, %s702_s9 }
  0x1a   : > { %625 = vmatprep.subr.bf16.mxu0 %v624_v23  ;;  %647 = vmatpush1.bf16.msra.mxu1 %v646_v40  ;;  %v642_v56 = vpack.c.bf16 %v264_v55, %v263_v54  ;;  %v370_v0 = vld [vmem:[%s1028_s3 + $0x38] sm:$0xff]  ;;  %v367_v2 = vld [vmem:[%s1028_s3 + $0x20] sm:$0xff]  ;;  %v369_v3 = vld [vmem:[%s1028_s3 + $0x30] sm:$0xff]  ;;  %p698_p11 = scmp.ne.s32.totalorder %s977_s23, %s697_s22  ;;  %p705_p1 = scmp.lt.s32.totalorder %s703_s10, %s697_s22 }
  0x1b   : > { %v648_v1 = vpack.c.bf16 %v370_v0, %v368_v63  ;;  %v650_v4 = vpack.c.bf16 %v369_v3, %v367_v2  ;;  %v559_v7 = vld [vmem:[%s1027_s2] ss:$0 sm:$0xff] }
  0x1c   : > { %v371_v17 = vld [vmem:[%s1029_s4] sm:$0x3]  ;;  %p699_p12 = pnand %p698_p11, %p835_p5  ;;  %p706_p2 = por %p705_p1, %p704_p0 }
  0x1d   : > { %235 = vperm.xlu0 %696, %v227_v22   ;;  %627 = vmatpush3.bf16.msra.mxu0 %v626_v28  ;;  %v376_v19 = vrot.slane %v371_v17, %v375_v16  ;;  %v380_v20 = vrot.slane %v371_v17, %v379_v18 }
  0x1e   : > { %629 = vmatprep.subr.bf16.mxu0 %v628_v30  ;;  %649 = vmatprep.subr.bf16.mxu1 %v648_v1  ;;  %p700_p13 = pneg %p699_p12 }
  0x1f   : > { %651 = vmatpush1.bf16.msra.mxu1 %v650_v4 }
  0x20   : > { %p707_p3 = pnand %p706_p2, %p700_p13 }
  0x21   : > { %631 = vmatpush3.bf16.msra.mxu0 %v630_v39 }
  0x22   : > { %633 = vmatprep.subr.bf16.mxu0 %v632_v41 }
  0x25   : > { %635 = vmatpush3.bf16.msra.mxu0 %v634_v46 }
  0x26   : > { %637 = vmatprep.subr.bf16.mxu0 %v636_v47 }
  0x29   : > { %639 = vmatpush3.bf16.msra.mxu0 %v638_v52 }
  0x2a   : > { %641 = vmatprep.subr.bf16.mxu0 %v640_v53 }
  0x2d   : > { %643 = vmatpush3.bf16.msra.mxu0 %v642_v56 }
  0x98   : > { %v233_v60 = vpop.permute.xlu0 %232 }
  0x99   : > { %vm237_vm0 = vcmp.eq.s32.totalorder %v233_v60, %v229_v58  ;;  %vm238_vm1 = vcmp.eq.s32.totalorder %v233_v60, %v230_v59 }
  0x9a   : > { %560 = vmatprep.mubr.msk.f32.mxu0 %vm238_vm1, %v762_v61 }
  0x9b   : > { %561 = vmatmul.mubr.msk.f32.vlgmr.msra.gmra.mrb[0].mxu0 %vm237_vm0, %v762_v61 }
  0x9c   : > { %v236_v62 = vpop.permute.xlu0 %235 }
  0x9d   : > { %vm239_vm2 = vcmp.eq.s32.totalorder %v236_v62, %v229_v58  ;;  %vm240_vm3 = vcmp.eq.s32.totalorder %v236_v62, %v230_v59 }
  0x9e   : > { %562 = vmatprep.mubr.msk.f32.mxu0 %vm240_vm3, %v762_v61 }
  0x9f   : > { %563 = vmatmul.mubr.msk.f32.gmra.mrb[2].mxu0 %vm239_vm2, %v762_v61 }
 0x16e   : > { %v606_v6 = vpop.f32.mrb[0].mxu0 }
 0x16f   : > { %v607_v8 = vpop.f32.mrb[1].mxu0 }
 0x170   : > { %v608_v9 = vadd.f32 %v607_v8, %v606_v6 }
 0x172   : > { %v355_v10 = vadd.f32 %v608_v9, %v559_v7  ;;  %v609_v11 = vpop.f32.mrb[2].mxu0 }
 0x173   : > { %v610_v12 = vpop.f32.mrb[3].mxu0 }
 0x174   : > { %v611_v13 = vadd.f32 %v610_v12, %v609_v11  ;;  %564 = vmatmul.mubr.msk.f32.vlgmr.msra.gmra.mrb[0].mxu1 %vm383_vm4, %v355_v10 }
 0x175   : > { %460 = vmatprep.mubr.f32.mxu1 %v763_v5 }
 0x176   : > { %v360_v14 = vadd.f32 %v611_v13, %v559_v7 }
 0x178   : > { %565 = vmatmul.mubr.msk.f32.gmra.mrb[2].mxu1 %vm383_vm4, %v360_v14 }
 0x247   : > { %v456_v21 = vpop.f32.mrb[0].mxu1 }
 0x248   : > { %v457_v22 = vadd.f32 %v456_v21, %v376_v19  ;;  %v458_v23 = vpop.f32.mrb[1].mxu1 }
 0x249   : > { %v459_v24 = vadd.f32 %v458_v23, %v380_v20 }
 0x24a   : > { %467 = vst [vmem:[%s218_s17] sm:$0xff] %v457_v22 }
 0x24b   : > { %468 = vst [vmem:[%s218_s17 + $0x8] sm:$0xff] %v459_v24  ;;  %v462_v25 = vpop.f32.mrb[2].mxu1 }
 0x24c   : > { %v463_v26 = vadd.f32 %v462_v25, %v376_v19  ;;  %v464_v27 = vpop.f32.mrb[3].mxu1 }
 0x24d   : > { %v465_v28 = vadd.f32 %v464_v27, %v380_v20 }
 0x24e   : > { %469 = vst [vmem:[%s218_s17 + $0x10] sm:$0xff] %v463_v26 }
 0x24f   : > { %470 = vst [vmem:[%s218_s17 + $0x18] sm:$0xff] %v465_v28 }
 0x250   : > { %710 = shalt.err (!%p707_p3)
}
 0x251   : > { %s711_s11 = scalar_lea.hbm %s982_s30, 512  ;;  %s715_s14 = scalar_lea.hbm %s1030_s5, 1024 }
 0x252   : > { %p712_p4 = scmp.ne.s32.totalorder %s982_s30, %s711_s11  ;;  %p716_p9 = scmp.lt.u32.totalorder %s982_s30, %s1030_s5 }
 0x253   : > { %p717_p10 = scmp.lt.u32.totalorder %s715_s14, %s711_s11  ;;  %p719_p12 = scmp.lt.u32.totalorder %s711_s11, %s982_s30 }
 0x254   : > { %p713_p7 = pnand %p712_p4, %p835_p5 }
 0x255   : > { %p718_p11 = por %p717_p10, %p716_p9 }
 0x256   : > { %p714_p8 = pneg %p713_p7 }
 0x257   : > { %p720_p13 = por %p719_p12, %p718_p11 }
 0x259   : > { %p721_p0 = pnand %p720_p13, %p714_p8 }
 0x25b   : > { %724 = shalt.err (!%p721_p0)
}
 0x25c   : > { %s765_s17 = smov 256   ;;  %s766_s25 = smov 16  }
 0x25d   : > { %652 = dma.vmem_to_hbm [thread:$0]  (%p835_p5), %s977_s23, 512, %s982_s30, %s984_s7, %s765_s17, %s765_s17, %s766_s25  }
 0x25e PF: > { %p658_p1 = scmp.ge.s32.totalorder %s759_s21, 2  ;;  %s501_s26 = sand.u32 1, %s747_s18  }
 0x25f   : > { %s502_s6 = scalar_lea.sflag [#allocation3], %s501_s26 }
 0x260   : > { %p655_p2 = pnand %p658_p1, %p839_p6 }
 0x262   : > { %742 = dma.done.wait (!%p655_p2), %s502_s6, 512  }
 0x263   : > { %744 = vsyncadd (!%p655_p2), %s502_s6, 4294966784  ;;  %p15_p3 = scmp.ge.s32.totalorder %s822_s24, 4   ;;  %s1033_s18 = smov %s751_s19 }
 0x264   : > { %s1034_s19 = smov %s755_s20  ;;  %s1035_s20 = smov %s833_s27 }
 0x265   : > { %s1036_s21 = smov %s822_s24  ;;  %17 = sbr.rel (!%p15_p3) target bundleno = 3 (0x3), region = 75 }
 0x26c   :  { %507 = vsyncpa [#allocation3], 1 }
 0x26d   :  { %509 = vsyncpa [#allocation3 + $0x1], 1 }

</bundles_post_ra>
